<compile_context>
chip_gen: v6e
topology: v6e:2x2x1
jax: 0.10.0
libtpu: 0.0.40
codegen_flags: <defaults>
</compile_context>

<pallas_src>
import math

import jax
import jax.numpy as jnp
from jax.experimental import pallas as pl
from jax.experimental.pallas import tpu as pltpu

_LANE = 128


def _device_params():
    """Returns (target_block_bytes, vmem_limit_bytes), generation-aware."""
    kind = ""
    try:
        kind = jax.devices()[0].device_kind.lower()
    except Exception:
        pass
    if "v7" in kind:
        # v7x: 64 MiB physical VMEM per TC.  ~4 MiB tiles; 3 streams x 2 buffers
        # ~= 24 MiB stays under the 32 MiB scoped limit.  Never assume 128 MiB.
        return 4 * 1024 * 1024, 32 * 1024 * 1024
    # v5e / v6e: 128 MiB physical VMEM but small default scoped limits
    # (16 / 32 MiB) -> raise explicitly so 4 MiB tiles double-buffer comfortably.
    return 4 * 1024 * 1024, 64 * 1024 * 1024


def _build_pe(d_model: int, max_len: int = 5000, dtype=jnp.float32) -> jnp.ndarray:
    """Sinusoidal positional-encoding table, shape (1, max_len_padded, d_model).

    register_buffer analog: built once at module setup, pre-cast to the
    activation dtype.  max_len is rounded up so (max_len * d_model) % 128 == 0,
    guaranteeing the lane-dense flattened view is always available; the extra
    rows are valid sinusoids for positions >= max_len and are never read.
    """
    m = _LANE // math.gcd(d_model, _LANE)
    max_len = -(-max_len // m) * m
    position = jnp.arange(0, max_len, dtype=jnp.float32)[:, None]               # (L, 1)
    div_term = jnp.exp(
        jnp.arange(0, d_model, 2, dtype=jnp.float32) * (-math.log(10000.0) / d_model)
    )                                                                            # (D/2,)
    angles = position * div_term                                                 # (L, D/2)
    pe = jnp.zeros((max_len, d_model), dtype=jnp.float32)
    pe = pe.at[:, 0::2].set(jnp.sin(angles))
    pe = pe.at[:, 1::2].set(jnp.cos(angles))
    return pe[None, :, :].astype(dtype)                                          # (1, L, D)


def _add_pe_kernel(x_ref, pe_ref, o_ref):
    # x_ref / o_ref: (TB, tr, lane) blocks; pe_ref: (1, pe_tr >= tr, lane).
    # Static in-register slice of pe down to x's row extent (no wrapper-side
    # pe slice / extra HBM pass), then broadcast over the batch-tile axis.
    # Dtype cast (if any) runs on the VPU for free.
    tr = x_ref.shape[1]
    o_ref[...] = x_ref[...] + pe_ref[:, :tr, :].astype(x_ref.dtype)


def positional_encoding_forward(x: jnp.ndarray, pe: jnp.ndarray) -> jnp.ndarray:
    """x: (B, S, D); pe: (1, max_len, D).  Returns x + pe[:, :S] (broadcast over B)."""
    B, S, D = x.shape
    _, max_len, Dp = pe.shape
    assert Dp == D and S <= max_len

    target_bytes, vmem_limit = _device_params()
    itemsize = jnp.dtype(x.dtype).itemsize
    sub = max(8, 32 // itemsize)  # sublane multiple: 8 (f32) / 16 (bf16) / 32 (int8)

    # ---- choose a lane-dense view -------------------------------------------------
    reshaped = False
    if D % _LANE == 0:
        rows, lane = S, D
        x_view, pe_view = x, pe
    elif (S * D) % _LANE == 0:
        # Flatten (S, D) -> (S*D/128, 128) so every vreg lane carries data and
        # stores are unmasked.  pe is flattened over its largest aligned prefix
        # (== max_len when built by _build_pe, so no slice happens).
        m = _LANE // math.gcd(D, _LANE)
        L = (max_len // m) * m
        if L >= S:
            rows, lane = (S * D) // _LANE, _LANE
            x_view = x.reshape(B, rows, lane)
            pe_src = pe if L == max_len else pe[:, :L, :]
            pe_view = pe_src.reshape(1, (L * D) // _LANE, _LANE)
            reshaped = True
        else:
            rows, lane = S, D
            x_view, pe_view = x, pe
    else:
        # Generic fallback (masked partial stores when D < 128); still correct.
        rows, lane = S, D
        x_view, pe_view = x, pe

    pe_rows = pe_view.shape[1]

    # ---- row tiling ---------------------------------------------------------------
    row_bytes = lane * itemsize
    tr_target = max(sub, (target_bytes // row_bytes) // sub * sub)
    if rows % sub == 0:
        tr = min(rows, tr_target)       # sublane-aligned tile
        pe_tr = tr
    elif rows > tr_target:
        # Aligned tile; the last x/pe blocks are partial (masked).  The garbage
        # trailing rows only feed output rows that are never written back, so
        # reading past S's extent of pe here is safe by construction.
        tr = tr_target
        pe_tr = tr
    else:
        # Tiny / unaligned: x uses a full-extent block; pe gets a sublane-rounded
        # block (clamped to its full extent) and is sliced inside the kernel.
        tr = rows
        pe_tr = min(-(-rows // sub) * sub, pe_rows)

    # ---- batch tiling: pack batch elements per block when the per-batch slab is small
    TB = max(1, min(B, target_bytes // max(tr * row_bytes, 1)))

    # Row tiles outermost, batch tiles innermost: pe's block index is constant
    # across the inner loop, so each pe tile is fetched once per row tile.
    grid = (pl.cdiv(rows, tr), pl.cdiv(B, TB))

    out_view = pl.pallas_call(
        _add_pe_kernel,
        out_shape=jax.ShapeDtypeStruct((B, rows, lane), x.dtype),
        grid_spec=pltpu.PrefetchScalarGridSpec(
            num_scalar_prefetch=0,
            grid=grid,
            in_specs=[
                pl.BlockSpec((TB, tr, lane), lambda r, b: (b, r, 0)),     # x
                pl.BlockSpec((1, pe_tr, lane), lambda r, b: (0, r, 0)),   # pe (broadcast over batch)
            ],
            out_specs=pl.BlockSpec((TB, tr, lane), lambda r, b: (b, r, 0)),
        ),
        compiler_params=pltpu.CompilerParams(
            # Megacore split stays on the row-tile axis (each pe tile owned by
            # one core); batch axis is the sequential inner loop.
            dimension_semantics=("parallel", "arbitrary"),
            vmem_limit_bytes=vmem_limit,
        ),
    )(x_view, pe_view)

    return out_view.reshape(B, S, D) if reshaped else out_view


if __name__ == "__main__":
    # Small shapes consistent with the module: batch=2, seq=8, d_model=32.
    B, S, D = 2, 8, 32
    max_len = 64  # small max_len for the example (module default is 5000)

    key = jax.random.PRNGKey(0)
    x = jax.random.normal(key, (B, S, D), dtype=jnp.float32)

    # Built once, already in the activation dtype (register_buffer analog).
    pe = _build_pe(D, max_len=max_len, dtype=x.dtype)

    out = jax.block_until_ready(positional_encoding_forward(x, pe))

    # Cross-check against the plain-JAX reference of the PyTorch forward.
    ref = x + pe[:, :S, :]
    assert out.shape == (B, S, D)
    assert jnp.allclose(out, ref, atol=1e-6, rtol=1e-6)

    print("KERNEL_OK")
</pallas_src>

<mosaic_0001>
module attributes {stable_mosaic.version = 11 : i64} {
  func.func @_add_pe_kernel(%arg0: i32, %arg1: i32, %arg2: memref<2x2x128xf32, #tpu.memory_space<vmem>>, %arg3: memref<1x8x128xf32, #tpu.memory_space<vmem>>, %arg4: memref<2x2x128xf32, #tpu.memory_space<vmem>>) attributes {dimension_semantics = [#tpu.dimension_semantics<parallel>, #tpu.dimension_semantics<arbitrary>], iteration_bounds = array<i64: 1, 1>, scalar_prefetch = 0 : i64, scratch_operands = 0 : i64, tpu.core_type = #tpu.core_type<tc>, window_params = [{transform_indices = @transform_0, window_bounds = array<i64: 2, 2, 128>}, {transform_indices = @transform_1, window_bounds = array<i64: 1, 8, 128>}, {transform_indices = @transform_2, window_bounds = array<i64: 2, 2, 128>}]} {
    %c0 = arith.constant 0 : index
    %c0_0 = arith.constant 0 : index
    %c0_1 = arith.constant 0 : index
    %0 = vector.load %arg2[%c0, %c0_0, %c0_1] : memref<2x2x128xf32, #tpu.memory_space<vmem>>, vector<2x2x128xf32>
    %c0_2 = arith.constant 0 : index
    %c0_3 = arith.constant 0 : index
    %c0_4 = arith.constant 0 : index
    %1 = vector.load %arg3[%c0_2, %c0_3, %c0_4] : memref<1x8x128xf32, #tpu.memory_space<vmem>>, vector<1x2x128xf32>
    %2 = vector.broadcast %1 : vector<1x2x128xf32> to vector<2x2x128xf32>
    %3 = arith.addf %0, %2 : vector<2x2x128xf32>
    %c0_5 = arith.constant 0 : index
    %c0_6 = arith.constant 0 : index
    %c0_7 = arith.constant 0 : index
    %4 = vector.load %arg4[%c0_5, %c0_6, %c0_7] : memref<2x2x128xf32, #tpu.memory_space<vmem>>, vector<2x2x128xf32>
    tpu.vector_store %arg4[%c0_5, %c0_6, %c0_7], %3 {strides = array<i32>} : memref<2x2x128xf32, #tpu.memory_space<vmem>>, vector<2x2x128xf32>,
    return
  }
  func.func @transform_0(%arg0: i32, %arg1: i32) -> (i32, i32, i32) {
    %c0_i32 = arith.constant 0 : i32
    %c0_i32_0 = arith.constant 0 : i32
    return %arg1, %arg0, %c0_i32 : i32, i32, i32
  }
  func.func @transform_1(%arg0: i32, %arg1: i32) -> (i32, i32, i32) {
    %c0_i32 = arith.constant 0 : i32
    %c0_i32_0 = arith.constant 0 : i32
    %c0_i32_1 = arith.constant 0 : i32
    return %c0_i32, %arg0, %c0_i32_0 : i32, i32, i32
  }
  func.func @transform_2(%arg0: i32, %arg1: i32) -> (i32, i32, i32) {
    %c0_i32 = arith.constant 0 : i32
    %c0_i32_0 = arith.constant 0 : i32
    return %arg1, %arg0, %c0_i32 : i32, i32, i32
  }
}

</mosaic_0001>

<bundles_post_ra>
// kernel: tpu_custom_call.1
= control target key start
LH: loop header
LB: loop body
LE: loop exit
PB: predicated region body
PF: predicated region fallthrough
CT: control target
= control target key end

     0   :  { %7 = vsyncpa [#allocation3], 0  ;;  %s169_s0 = inlined_call_operand.hbm [shape: f32[2,2,128], index: 0, kind: input, shape index: {}]   ;;  %s170_s1 = inlined_call_operand.hbm [shape: f32[1,16,128], index: 1, kind: input, shape index: {}]   ;;  %s171_s2 = inlined_call_operand.hbm [shape: f32[2,2,128], index: 2, kind: output, shape index: {}]  }
   0x1   :  { %8 = vsyncpa [#allocation6], 0 }
   0x2   :  { %9 = vsyncpa [#allocation4], 0  ;;  %s134_s9 = smov [#allocation2]  }
   0x3   :  { %s15_s10 = sshll.u32 %s134_s9, 4  ;;  %s16_s10 = int_to_ptr.vmem [resolvable:$true] %s15_s10 }
   0x4   :  { %s76_s11 = scalar_lea.vmem %s16_s10, 64  ;;  %p81_p1 = scmp.lt.s32.totalorder %s16_s10, %s16_s10 }
   0x5   :  { %p77_p0 = scmp.ne.s32.totalorder %s16_s10, %s76_s11  ;;  %p82_p2 = scmp.lt.s32.totalorder %s76_s11, %s76_s11 }
   0x7   :  { %p83_p3 = por %p82_p2, %p81_p1 }
   0x9   :  { %p84_p4 = pnand %p83_p3, %p77_p0 }
   0xb   :  { %87 = shalt.err (!%p84_p4)
}
   0xc   :  { %s135_s12 = smov 32   ;;  %s136_s13 = smov 2  }
   0xd   :  { %21 = dma.hbm_to_vmem [thread:$0]  %s169_s0, 64, %s16_s10, [#allocation3], %s135_s12, %s135_s12, %s136_s13  }
   0xe   :  { %s137_s16 = smov [#allocation5]  }
   0xf   :  { %s28_s17 = sshll.u32 %s137_s16, 4  ;;  %s29_s17 = int_to_ptr.vmem [resolvable:$true] %s28_s17 }
  0x10   :  { %s96_s18 = scalar_lea.vmem %s29_s17, 128  ;;  %p101_p6 = scmp.lt.s32.totalorder %s29_s17, %s29_s17 }
  0x11   :  { %p97_p5 = scmp.ne.s32.totalorder %s29_s17, %s96_s18  ;;  %p102_p7 = scmp.lt.s32.totalorder %s96_s18, %s96_s18 }
  0x13   :  { %p103_p8 = por %p102_p7, %p101_p6 }
  0x15   :  { %p104_p9 = pnand %p103_p8, %p97_p5 }
  0x17   :  { %107 = shalt.err (!%p104_p9)
}
  0x18   :  { %31 = dma.hbm_to_vmem [thread:$0]  %s170_s1, 128, %s29_s17, [#allocation6]  }
  0x19   :  { %128 = dma.done.wait [#allocation3], 64  }
  0x1a   :  { %129 = vsyncadd [#allocation3], 4294967232 }
  0x1b   :  { %130 = dma.done.wait [#allocation6], 128  }
  0x1c   :  { %131 = vsyncadd [#allocation6], 4294967168  ;;  %s138_s21 = smov [#allocation7]   ;;  %v38_v0 = vld [vmem:[#allocation2] sm:$0x3] }
  0x1d   :  { %s50_s0 = sshll.u32 %s138_s21, 4  ;;  %v40_v1 = vld [vmem:[#allocation5] sm:$0x3]  ;;  %v39_v2 = vld [vmem:[#allocation2 + $0x2] sm:$0x3]  ;;  %s51_s0 = int_to_ptr.vmem [resolvable:$true] %s50_s0 }
  0x1e   :  { %v41_v3 = vadd.f32 %v40_v1, %v38_v0  ;;  %v42_v4 = vadd.f32 %v40_v1, %v39_v2  ;;  %s108_s22 = scalar_lea.vmem %s51_s0, 64  ;;  %p113_p11 = scmp.lt.s32.totalorder %s51_s0, %s51_s0 }
  0x1f   :  { %p109_p10 = scmp.ne.s32.totalorder %s51_s0, %s108_s22  ;;  %p114_p12 = scmp.lt.s32.totalorder %s108_s22, %s108_s22 }
  0x20   :  { %43 = vst [vmem:[#allocation7] sm:$0x3] %v41_v3  ;;  %44 = vst [vmem:[#allocation7 + $0x2] sm:$0x3] %v42_v4 }
  0x21   :  { %p115_p13 = por %p114_p12, %p113_p11 }
  0x23   :  { %p116_p0 = pnand %p115_p13, %p109_p10 }
  0x25   :  { %119 = shalt.err (!%p116_p0)
}
  0x26   :  { %56 = dma.vmem_to_hbm [thread:$0]  %s51_s0, 64, %s171_s2, [#allocation4], %s135_s12, %s135_s12, %s136_s13  }
  0x27   :  { %132 = dma.done.wait [#allocation4], 64  }
  0x28   :  { %133 = vsyncadd [#allocation4], 4294967232 }
  0x29   :  { %60 = vsyncpa [#allocation3], 1 }
  0x2a   :  { %61 = vsyncpa [#allocation6], 1 }
  0x2b   :  { %62 = vsyncpa [#allocation4], 1 }

</bundles_post_ra>
